<compile_context>
chip_gen: v6e
topology: v6e:2x2x1
jax: 0.10.0
libtpu: 0.0.40
codegen_flags: <defaults>
</compile_context>

<pallas_src>
import functools

import jax
import jax.numpy as jnp
from jax import lax
from jax.experimental import pallas as pl
from jax.experimental.pallas import tpu as pltpu


def _encoder_kernel(x_ref, w_ref, b_ref, o_ref):
    """One grid step = one row tile of the (already shuffled) [M_pad, P_pad] patches.

    x_ref : VMEM [TM, P_pad]     bf16  shuffled patches of this tile
    w_ref : VMEM [P_pad, hidden] bf16  flattened conv weight (grid-invariant)
    b_ref : VMEM [1, hidden]     f32   conv bias (grid-invariant)
    o_ref : VMEM [TM, hidden]    f32   patch embeddings
    """
    # Patch-embedding matmul on the MXU (bf16 inputs, f32 accumulate) + bias add.
    # TODO(synk): emit bf16 here if the downstream consumer tolerates it (halves
    # output HBM writeback).
    o_ref[...] = (
        jnp.dot(x_ref[...], w_ref[...], preferred_element_type=jnp.float32)
        + b_ref[...]
    ).astype(o_ref.dtype)


def _round_up(v, m):
    return (v + m - 1) // m * m


def _choose_tm(m, p_pad, hidden, vmem_budget_bytes=40 * 1024 * 1024):
    """Rows per grid step, sized from a VMEM budget (not from the patch count)."""
    # Double-buffered streaming input + output, plus the (double-buffered) resident
    # weight / bias blocks.
    # TODO(synk): mark weight/bias with pipeline_mode=pl.Buffered(1) to reclaim the
    # second resident-weight buffer for very large hidden dims.
    fixed = 2 * p_pad * hidden * 2 + 2 * hidden * 4
    per_row = 2 * (p_pad * 2 + hidden * 4)
    tm = max(16, (vmem_budget_bytes - fixed) // per_row)
    tm = min(tm, 1024)                       # diminishing returns past ~512-1024 rows
    tm = min(tm, _round_up(m, 16))           # never bigger than the (padded) problem
    if m >= 32:                              # >= 2 grid steps => megacore sharding (v7x)
        tm = min(tm, _round_up(pl.cdiv(m, 2), 16))
    return max(16, (tm // 16) * 16)          # bf16 LHS: keep TM a multiple of 16


@functools.partial(jax.jit, static_argnames=("patch",))
def linear_encoder_forward(x, weight, bias, perm, *, patch):
    """x: [B, C, H, W] f32 NCHW; weight: [hidden, C, patch, patch]; bias: [hidden];
    perm: [B, N] int32 per-batch patch permutation. Returns [B, N, hidden] f32."""
    B, C, H, W = x.shape
    hidden = weight.shape[0]
    hp, wp = H // patch, W // patch
    N = hp * wp
    P = C * patch * patch
    M = B * N
    P_pad = _round_up(P, 128)

    # ---- Wrapper-side layout prep: a single fused XLA pass -----------------------
    # Patch extraction (NCHW -> [B, N, P], per-patch order (C, kh, kw) matching
    # Conv2d's OIHW flattening) + per-batch pixel-shuffle gather + K-dim zero pad +
    # bf16 cast.  The shuffle lives here because permuting rows commutes with X@W+b.
    # TODO(synk): for very large images fold the patch extraction into the kernel
    # (grid over patch rows with an x BlockSpec of (bb, C, patch, W)) to save this
    # extra HBM pass over the activations.
    patches = x.reshape(B, C, hp, patch, wp, patch)
    patches = patches.transpose(0, 2, 4, 1, 3, 5).reshape(B, N, P)
    patches = jnp.take_along_axis(patches, perm.astype(jnp.int32)[:, :, None], axis=1)
    patches = patches.reshape(M, P)

    TM = _choose_tm(M, P_pad, hidden)
    M_pad = _round_up(M, TM)
    num_tiles = M_pad // TM

    patches = jnp.pad(patches, ((0, M_pad - M), (0, P_pad - P))).astype(jnp.bfloat16)

    # Weight OIHW -> [P, hidden]; pad the contraction dim only.  hidden stays
    # un-padded so the output is written once at its real width.
    # TODO(synk): if the encoder feeds another matmul, fuse it into this kernel so
    # the MXU N dim reaches >= 256 on v6e/v7x.
    w_flat = jnp.pad(weight.reshape(hidden, P).T,
                     ((0, P_pad - P), (0, 0))).astype(jnp.bfloat16)
    b_flat = bias.astype(jnp.float32).reshape(1, hidden)

    out = pl.pallas_call(
        _encoder_kernel,
        out_shape=jax.ShapeDtypeStruct((M_pad, hidden), jnp.float32),
        grid=(num_tiles,),
        in_specs=[
            pl.BlockSpec((TM, P_pad), lambda i: (i, 0)),      # shuffled patches (bf16)
            pl.BlockSpec((P_pad, hidden), lambda i: (0, 0)),  # weight, grid-invariant
            pl.BlockSpec((1, hidden), lambda i: (0, 0)),      # bias, grid-invariant
        ],
        out_specs=pl.BlockSpec((TM, hidden), lambda i: (i, 0)),
        compiler_params=pltpu.CompilerParams(
            dimension_semantics=("parallel",),
            vmem_limit_bytes=48 * 1024 * 1024,   # tiles budgeted to ~40 MiB; v7x-safe
        ),
    )(patches, w_flat, b_flat)

    # M_pad == M for typical configs (and the demo), so this is a free reshape.
    return out[:M].reshape(B, N, hidden)


def _reference_forward(x, weight, bias, perm, patch):
    """Pure-JAX f32 reference matching the PyTorch forward (given the same permutation)."""
    conv = lax.conv_general_dilated(
        x, weight, window_strides=(patch, patch), padding="VALID",
        dimension_numbers=("NCHW", "OIHW", "NCHW"),
    ) + bias[None, :, None, None]
    B, Cc, Hh, Ww = conv.shape
    encoded = conv.reshape(B, Cc, Hh * Ww).transpose(0, 2, 1)     # [B, N, hidden]
    return jnp.take_along_axis(encoded, perm[:, :, None], axis=1)


if __name__ == "__main__":
    # Small config consistent with the module:
    #   args.num_chan=4, args.img_size=(16,16), args.private_kernel_size=4,
    #   args.hidden_dim=32, pixel shuffle enabled.
    B, C, H, W = 2, 4, 16, 16
    patch = 4
    hidden = 32
    N = (H // patch) * (W // patch)   # 16 patches

    key = jax.random.PRNGKey(0)
    kx, kw, kb, kp = jax.random.split(key, 4)

    x = jax.random.normal(kx, (B, C, H, W), dtype=jnp.float32)

    # Deterministic Conv2d-style init (uniform in +/- 1/sqrt(fan_in)).
    fan_in = C * patch * patch
    bound = 1.0 / (fan_in ** 0.5)
    weight = jax.random.uniform(kw, (hidden, C, patch, patch), jnp.float32, -bound, bound)
    bias = jax.random.uniform(kb, (hidden,), jnp.float32, -bound, bound)

    # Per-batch random patch permutation (torch.randperm equivalent; RNG source differs).
    perm = jnp.stack(
        [jax.random.permutation(k, N) for k in jax.random.split(kp, B)]
    ).astype(jnp.int32)

    out = jax.block_until_ready(linear_encoder_forward(x, weight, bias, perm, patch=patch))

    ref = _reference_forward(x, weight, bias, perm, patch)
    assert out.shape == (B, N, hidden)
    # bf16 multiplies with f32 accumulation vs a pure-f32 reference -> modest tolerance.
    assert jnp.allclose(out, ref, atol=2e-2, rtol=2e-2), "mismatch vs JAX reference"

    print("KERNEL_OK")
</pallas_src>

<mosaic_0001>
module attributes {stable_mosaic.version = 11 : i64} {
  func.func @_encoder_kernel(%arg0: i32, %arg1: memref<16x128xbf16, #tpu.memory_space<vmem>>, %arg2: memref<128x32xbf16, #tpu.memory_space<vmem>>, %arg3: memref<1x32xf32, #tpu.memory_space<vmem>>, %arg4: memref<16x32xf32, #tpu.memory_space<vmem>>) attributes {dimension_semantics = [#tpu.dimension_semantics<parallel>], iteration_bounds = array<i64: 2>, scalar_prefetch = 0 : i64, scratch_operands = 0 : i64, tpu.core_type = #tpu.core_type<tc>, window_params = [{transform_indices = @transform_0, window_bounds = array<i64: 16, 128>}, {pipeline_mode = #tpu.pipeline_mode<synchronous>, transform_indices = @transform_1, window_bounds = array<i64: 128, 32>}, {pipeline_mode = #tpu.pipeline_mode<synchronous>, transform_indices = @transform_2, window_bounds = array<i64: 1, 32>}, {transform_indices = @transform_3, window_bounds = array<i64: 16, 32>}]} {
    %c0 = arith.constant 0 : index
    %c0_0 = arith.constant 0 : index
    %0 = vector.load %arg1[%c0, %c0_0] : memref<16x128xbf16, #tpu.memory_space<vmem>>, vector<16x128xbf16>
    %c0_1 = arith.constant 0 : index
    %c0_2 = arith.constant 0 : index
    %1 = vector.load %arg2[%c0_1, %c0_2] : memref<128x32xbf16, #tpu.memory_space<vmem>>, vector<128x32xbf16>
    %cst = arith.constant dense<0.000000e+00> : vector<16x32xf32>
    %2 = tpu.matmul %0, %1, %cst {dimension_numbers = #tpu.dot_dimension_numbers<[1], [0], [0], [1], [0, 0, 1, 1], [], []>} : vector<16x128xbf16>, vector<128x32xbf16>, vector<16x32xf32> -> vector<16x32xf32>
    %c0_3 = arith.constant 0 : index
    %c0_4 = arith.constant 0 : index
    %3 = vector.load %arg3[%c0_3, %c0_4] : memref<1x32xf32, #tpu.memory_space<vmem>>, vector<1x32xf32>
    %4 = vector.broadcast %3 : vector<1x32xf32> to vector<16x32xf32>
    %5 = arith.addf %2, %4 : vector<16x32xf32>
    %c0_5 = arith.constant 0 : index
    %c0_6 = arith.constant 0 : index
    %6 = vector.load %arg4[%c0_5, %c0_6] : memref<16x32xf32, #tpu.memory_space<vmem>>, vector<16x32xf32>
    tpu.vector_store %arg4[%c0_5, %c0_6], %5 {strides = array<i32>} : memref<16x32xf32, #tpu.memory_space<vmem>>, vector<16x32xf32>,
    return
  }
  func.func @transform_0(%arg0: i32) -> (i32, i32) {
    %c0_i32 = arith.constant 0 : i32
    %c0_i32_0 = arith.constant 0 : i32
    return %arg0, %c0_i32 : i32, i32
  }
  func.func @transform_1(%arg0: i32) -> (i32, i32) {
    %c0_i32 = arith.constant 0 : i32
    %c0_i32_0 = arith.constant 0 : i32
    %c0_i32_1 = arith.constant 0 : i32
    return %c0_i32, %c0_i32_0 : i32, i32
  }
  func.func @transform_2(%arg0: i32) -> (i32, i32) {
    %c0_i32 = arith.constant 0 : i32
    %c0_i32_0 = arith.constant 0 : i32
    %c0_i32_1 = arith.constant 0 : i32
    return %c0_i32, %c0_i32_0 : i32, i32
  }
  func.func @transform_3(%arg0: i32) -> (i32, i32) {
    %c0_i32 = arith.constant 0 : i32
    %c0_i32_0 = arith.constant 0 : i32
    return %arg0, %c0_i32 : i32, i32
  }
}

</mosaic_0001>

<bundles_post_ra>
// kernel: linear_encoder_forward.1
= control target key start
LH: loop header
LB: loop body
LE: loop exit
PB: predicated region body
PF: predicated region fallthrough
CT: control target
= control target key end

     0   :  { %8 = vsyncpa [#allocation3], 0  ;;  %s691_s0 = inlined_call_operand.vmem [shape: bf16[32,128], index: 0, kind: input, shape index: {}]   ;;  %s692_s1 = inlined_call_operand.vmem [shape: bf16[128,32], index: 1, kind: input, shape index: {}]   ;;  %s693_s2 = inlined_call_operand.vmem [shape: f32[1,32], index: 2, kind: input, shape index: {}]   ;;  %s694_s3 = inlined_call_operand.hbm [shape: f32[32,32], index: 3, kind: output, shape index: {}]  }
   0x1   :  { %10 = vsyncpa [#allocation3 + $0x1], 0  ;;  %s563_s12 = smov 0   ;;  %s565_s13 = smov 0  }
   0x2   :  { %s567_s14 = smov 0   ;;  %s569_s15 = smov 0  }
   0x3 LB: > { %s584_s16 = sadd.s32 4294967295, %s536_s15   ;;  %s372_s17 = sadd.s32 4294967294, %s536_s15   ;;  %s536_s15 = sphi %s569_s15, %s700_s15   ;;  %s532_s14 = sphi %s567_s14, %s699_s14   ;;  %s528_s13 = sphi %s565_s13, %s698_s13   ;;  %s524_s12 = sphi %s563_s12, %s697_s12  }
   0x4   : > { %s588_s18 = sadd.s32 1, %s536_s15   ;;  %s91_s19 = sadd.s32 1, %s532_s14 }
   0x5   : > { %s88_s20 = ssub.s32 %s536_s15, %s588_s18  ;;  %p101_p0 = scmp.ne.s32.totalorder %s532_s14, %s528_s13 }
   0x6   : > { %p89_p1 = scmp.eq.s32.totalorder %s88_s20, 0  ;;  %p102_p2 = scmp.eq.s32.totalorder %s584_s16, 1 }
   0x7   : > { %p107_p3 = scmp.ne.s32.totalorder %s528_s13, %s524_s12  ;;  %p108_p4 = scmp.eq.s32.totalorder %s372_s17, 1 }
   0x8   : > { %s599_s21 = scalar_select %p89_p1, %s532_s14, %s91_s19  }
   0x9   : > { %p601_p5 = por %p102_p2, %p101_p0  ;;  %p605_p6 = por %p108_p4, %p107_p3 }
   0xa   : > { %p375_p7 = scmp.ge.s32.totalorder %s536_s15, 1  ;;  %p141_p8 = scmp.lt.s32.totalorder %s536_s15, 3 }
   0xc   : > { %p142_p9 = pnand %p375_p7, %p141_p8 }
   0xd   : > { %s377_s28 = sshll.u32 (!%p142_p9), %s584_s16, 1  ;;  %s162_s27 = sand.u32 (!%p142_p9), 1, %s528_s13  }
   0xe   : > { %145 = sbr.rel (%p142_p9) target bundleno = 265 (0x109), region = 32  ;;  %p166_p10 = scmp.lt.s32.totalorder (!%p142_p9), %s377_s28, 3 }
   0xf   : > { %s394_s6 = sshll.u32 (!%p142_p9), %s584_s16, 8  ;;  %s651_s10 = scalar_lea.sflag (!%p142_p9), [#allocation3], %s162_s27 }
  0x10   : > { %s649_s9 = scalar_lea.hbm (!%p142_p9), %s694_s3, %s394_s6  ;;  %s540_s16 = smov (!%p142_p9), [#allocation2]  }
  0x11   : > { %s480_s17 = sshll.u32 (!%p142_p9), %s540_s16, 4  ;;  %s481_s17 = int_to_ptr.vmem [resolvable:$false] %s480_s17 }
  0x12   : > { %s482_s19 = scalar_lea.vmem (!%p142_p9), %s481_s17, 512 }
  0x13   : > { %v467_v0 = vld [vmem:[%s692_s1 + $0x38] sm:$0xff]   ;;  %v538_v1 = vmov 0.0   ;;  %v468_v2 = vld [vmem:[%s692_s1 + $0x30] sm:$0xff]   ;;  %vm539_vm0 = vmmov 0   ;;  %s702_s28 = smov (!%p166_p10, %s377_s28), 3  ;;  %v469_v3 = vld [vmem:[%s692_s1 + $0x28] sm:$0xff]  }
  0x14   : > { %404 = vmatprep.subr.bf16.mxu0 %v538_v1  ;;  %420 = vmatprep.mubr.msk.bf16.mxu0 %vm539_vm0, %v538_v1  ;;  %s378_s4 = sshll.u32 %s702_s28, 2  ;;  %v470_v4 = vld [vmem:[%s692_s1 + $0x20] sm:$0xff]   ;;  %v471_v5 = vld [vmem:[%s692_s1 + $0x18] sm:$0xff]   ;;  %v472_v6 = vld [vmem:[%s692_s1 + $0x10] sm:$0xff]   ;;  %s376_s28 = sshll.u32 %s162_s27, 4  ;;  %vm293_vm1 = vcmask 261120  }
  0x15   : > { %405 = vmatpush3.bf16.msra.mxu0 %v467_v0  ;;  %s169_s7 = scalar_lea.vmem %s691_s0, %s378_s4  ;;  %v473_v7 = vld [vmem:[%s692_s1 + $0x8] sm:$0xff]   ;;  %v474_v8 = vld [vmem:[%s692_s1] sm:$0xff]   ;;  %s164_s4 = scalar_lea.vmem [#allocation2], %s376_s28 }
  0x16   : > { %406 = vmatprep.subr.bf16.mxu0 %v538_v1  ;;  %v475_v9 = vld [vmem:[%s169_s7] sm:$0xff]   ;;  %s310_s5 = sshll.u32 %s164_s4, 4  ;;  %s644_s5 = int_to_ptr.vmem [resolvable:$true] %s310_s5 }
  0x17   : > { %v379_v10 = vld [vmem:[%s693_s2] ss:$0 sm:$0xff]  ;;  %s476_s11 = scalar_lea.vmem %s644_s5, 256  ;;  %p483_p0 = scmp.lt.s32.totalorder %s644_s5, %s481_s17 }
  0x18   : > { %p477_p11 = scmp.ne.s32.totalorder %s644_s5, %s476_s11  ;;  %p484_p1 = scmp.lt.s32.totalorder %s482_s19, %s476_s11 }
  0x19   : > { %407 = vmatpush3.bf16.msra.mxu0 %v468_v2 }
  0x1a   : > { %408 = vmatprep.subr.bf16.mxu0 %v538_v1  ;;  %p478_p12 = pnand %p477_p11, %p601_p5  ;;  %p485_p2 = por %p484_p1, %p483_p0 }
  0x1c   : > { %p479_p13 = pneg %p478_p12 }
  0x1d   : > { %409 = vmatpush3.bf16.msra.mxu0 %v469_v3 }
  0x1e   : > { %410 = vmatprep.subr.bf16.mxu0 %v538_v1  ;;  %p486_p3 = pnand %p485_p2, %p479_p13 }
  0x21   : > { %411 = vmatpush3.bf16.msra.mxu0 %v470_v4 }
  0x22   : > { %412 = vmatprep.subr.bf16.mxu0 %v538_v1 }
  0x25   : > { %413 = vmatpush3.bf16.msra.mxu0 %v471_v5 }
  0x26   : > { %414 = vmatprep.subr.bf16.mxu0 %v538_v1 }
  0x29   : > { %415 = vmatpush3.bf16.msra.mxu0 %v472_v6 }
  0x2a   : > { %416 = vmatprep.subr.bf16.mxu0 %v538_v1 }
  0x2d   : > { %417 = vmatpush3.bf16.msra.mxu0 %v473_v7 }
  0x2e   : > { %418 = vmatprep.subr.bf16.mxu0 %v538_v1 }
  0x31   : > { %419 = vmatpush3.bf16.msra.mxu0 %v474_v8 }
  0x34   : > { %421 = vmatmul.mubr.bf16.vlgmr.msra.gmra.mxu0 %v475_v9 }
  0xf4   : > { %v286_v11 = vpop.f32.mrf.mxu0 }
  0xf5   : > { %v287_v12 = vadd.f32 %v379_v10, %v286_v11 }
  0xf6   : > { %v422_v13 = vpop.f32.mrf.mxu0 }
  0xf7   : > { %294 = vst.msk [vmem:[%s164_s4] sm:$0xff] %vm293_vm1, %v287_v12 }
  0xf8   : > { %v289_v14 = vpop.f32.mrf.mxu0 }
  0xf9   : > { %v290_v15 = vadd.f32 %v379_v10, %v289_v14 }
  0xfa   : > { %v423_v16 = vpop.f32.mrf.mxu0 }
  0xfb   : > { %295 = vst.msk [vmem:[%s164_s4 + $0x8] sm:$0xff] %vm293_vm1, %v290_v15 }
  0xfc   : > { %489 = shalt.err (!%p486_p3)
}
  0xfd   : > { %s490_s20 = scalar_lea.hbm %s649_s9, 256  ;;  %s494_s26 = scalar_lea.hbm %s694_s3, 512 }
  0xfe   : > { %p491_p4 = scmp.ne.s32.totalorder %s649_s9, %s490_s20  ;;  %p495_p9 = scmp.lt.s32.totalorder %s649_s9, %s694_s3 }
  0xff   : > { %p496_p10 = scmp.lt.s32.totalorder %s494_s26, %s490_s20 }
 0x100   : > { %p492_p7 = pnand %p491_p4, %p601_p5 }
 0x101   : > { %p497_p11 = por %p496_p10, %p495_p9 }
 0x102   : > { %p493_p8 = pneg %p492_p7 }
 0x104   : > { %p498_p12 = pnand %p497_p11, %p493_p8 }
 0x106   : > { %501 = shalt.err (!%p498_p12)
}
 0x107   : > { %s541_s29 = smov 128   ;;  %s542_s30 = smov 8  }
 0x108   : > { %424 = dma.vmem_to_hbm [thread:$0]  (%p601_p5), %s644_s5, 256, %s649_s9, %s651_s10, %s541_s29, %s541_s29, %s542_s30  }
 0x109 PF: > { %p430_p13 = scmp.ge.s32.totalorder %s536_s15, 2  ;;  %s325_s4 = sand.u32 1, %s524_s12  }
 0x10a   : > { %s326_s6 = scalar_lea.sflag [#allocation3], %s325_s4 }
 0x10b   : > { %p427_p0 = pnand %p430_p13, %p605_p6 }
 0x10d   : > { %p428_p1 = pneg %p427_p0 }
 0x10f   : > { %519 = dma.done.wait (%p428_p1), %s326_s6, 256  }
 0x110   : > { %521 = vsyncadd (%p428_p1), %s326_s6, 4294967040  ;;  %p13_p2 = scmp.ge.s32.totalorder %s588_s18, 4   ;;  %s697_s12 = smov %s528_s13 }
 0x111   : > { %s698_s13 = smov %s532_s14  ;;  %s699_s14 = smov %s599_s21 }
 0x112   : > { %s700_s15 = smov %s588_s18  ;;  %15 = sbr.rel (!%p13_p2) target bundleno = 3 (0x3), region = 67 }
 0x117   :  { %331 = vsyncpa [#allocation3], 1 }
 0x118   :  { %333 = vsyncpa [#allocation3 + $0x1], 1 }

</bundles_post_ra>
